<compile_context>
chip_gen: v7x
topology: tpu7x:2x2x1
jax: 0.10.0
libtpu: 0.0.40
codegen_flags: <defaults>
</compile_context>

<pallas_src>
import functools

import jax
import jax.numpy as jnp
from jax.experimental import pallas as pl
from jax.experimental.pallas import tpu as pltpu


_MAX_L_TILE = 16384     # lane-extent cap for one output tile
_MIN_L_TILE = 128


def _conv1d_kernel(xb_ref, xh_ref, w_ref, o_ref, *, kernel_size: int,
                   stride: int, l_tile: int):
    """One (batch, c_out-tile, L-tile) grid step.

    xb_ref: (S, C_in_p, TL)     de-interleaved body window (phase-major; S == stride)
    xh_ref: (S, C_in_p, HW)     halo: first HW de-interleaved columns of the next body tile
    w_ref:  (TC_out, K*C_in_p)  folded weight, column index = k*C_in_p + c
    o_ref:  (TC_out, TL)        lane-dense output tile
    """
    xb = xb_ref[...]                     # single full load of the input tile
    wins = {}
    taps = []
    for kk in range(kernel_size):        # static small K -> unrolled
        p, off = kk % stride, kk // stride
        if off == 0:
            taps.append(xb[p])
        else:
            if p not in wins:
                # lane-aligned concat (TL is a multiple of 128): body tile ++ halo columns
                wins[p] = jnp.concatenate([xb[p], xh_ref[p]], axis=-1)
            taps.append(wins[p][:, off:off + l_tile])
    # Sublane-aligned stack (C_in_p is a multiple of the packing granularity).
    xstack = taps[0] if kernel_size == 1 else jnp.concatenate(taps, axis=0)
    # Single deep MXU matmul per tile, f32 accumulation, cast to output dtype.
    o_ref[...] = jnp.dot(w_ref[...], xstack,
                         preferred_element_type=jnp.float32).astype(o_ref.dtype)


def _vmem_capacity_bytes() -> int:
    try:
        cap = getattr(pltpu.get_tpu_info(), "vmem_capacity_bytes", None)
        if cap:
            return int(cap)
    except Exception:
        pass
    return 64 * 1024 * 1024     # conservative default (v7x per-core VMEM)


def _round_up(x: int, m: int) -> int:
    return pl.cdiv(x, m) * m


def _choose_tiles(l_out, c_in_p, c_out, k, stride, hw_c, in_item, out_item, budget):
    def w_bytes(tc):                      # double-buffered folded-weight tile
        return 2 * tc * k * c_in_p * in_item

    # C_out tile: keep the full folded weight resident unless it eats the budget.
    # TODO(synk): add a C_in reduction grid axis (VMEM accumulator + pl.when) for huge K*C_in.
    tc_out = c_out
    if w_bytes(tc_out) > budget // 3:
        tc_out = 8
        while tc_out * 2 <= c_out and w_bytes(tc_out * 2) <= budget // 3:
            tc_out *= 2

    def step_bytes(tl):
        return (2 * stride * c_in_p * (tl + hw_c) * in_item   # body + halo (double-buffered)
                + w_bytes(tc_out)                             # weight (double-buffered)
                + 2 * tc_out * tl * out_item                  # output (double-buffered)
                + k * c_in_p * tl * in_item                   # stacked-taps value
                + tc_out * tl * 4)                            # f32 matmul result

    tl = min(_MAX_L_TILE, _round_up(l_out, _MIN_L_TILE))
    while tl > _MIN_L_TILE and step_bytes(tl) > budget:
        tl -= _MIN_L_TILE
    # Re-balance so the last tile is not mostly padding.
    j_tiles = pl.cdiv(l_out, tl)
    tl = min(tl, _round_up(pl.cdiv(l_out, j_tiles), _MIN_L_TILE))
    return tc_out, tl, pl.cdiv(l_out, tl)


def conv1d(x, weight, *, stride: int = 1, padding: int = 0,
           compute_dtype=None, l_tile=None):
    """Forward of the module: nn.Conv1d(C_in -> C_out, K, stride, padding, bias=False).

    x: (N, C_in, L); weight: (C_out, C_in, K) (PyTorch OIW). Returns (N, C_out, L_out),
    L_out = (L + 2*padding - K)//stride + 1.
    Note: compute_dtype=bf16 casts both operands to bf16 before the MXU (f32 accumulation).
    """
    n, c_in, l = x.shape
    c_out, c_in_w, k = weight.shape
    assert c_in == c_in_w, "channel mismatch"
    assert stride >= 1 and padding >= 0 and k >= 1
    l_out = (l + 2 * padding - k) // stride + 1
    assert l_out > 0, "invalid output length"

    cdt = jnp.dtype(compute_dtype) if compute_dtype is not None else x.dtype
    out_dtype = x.dtype
    in_item = jnp.dtype(cdt).itemsize
    out_item = jnp.dtype(out_dtype).itemsize

    # Pad C_in to the sublane packing granularity (8 for 32-bit, 16 for bf16, 32 for int8).
    sub = 8 * max(1, 4 // in_item)
    c_in_p = _round_up(c_in, sub)

    hw_d = (k - 1) // stride            # halo width in de-interleaved (per-phase) columns
    hw_c = max(hw_d, 1)

    vmem_cap = _vmem_capacity_bytes()
    budget = vmem_cap // 4
    tc_out, tl, j_tiles = _choose_tiles(l_out, c_in_p, c_out, k, stride, hw_c,
                                        in_item, out_item, budget)
    if l_tile is not None:
        assert l_tile % 128 == 0
        tl = l_tile
        j_tiles = pl.cdiv(l_out, tl)
    n_co = pl.cdiv(c_out, tc_out)

    # ---- wrapper-side plumbing (fusible into the pallas call via allow_input_fusion) ----
    # Folded weight: (C_out, C_in, K) -> (C_out, K*C_in_p); column index = k*C_in_p + c.
    w_f = jnp.transpose(weight, (0, 2, 1)).astype(cdt)            # (C_out, K, C_in)
    if c_in_p != c_in:
        w_f = jnp.pad(w_f, ((0, 0), (0, 0), (0, c_in_p - c_in)))
    w2 = w_f.reshape(c_out, k * c_in_p)

    # Zero-pad channels + length so the de-interleaved view covers every needed input column.
    # TODO(synk): handle the conv padding with in-kernel masked boundary tiles to drop this pass
    # entirely when allow_input_fusion cannot absorb it.
    l_d = j_tiles * tl + hw_c           # per-phase (de-interleaved) length
    l_total = l_d * stride
    xw = jnp.pad(x.astype(cdt),
                 ((0, 0), (0, c_in_p - c_in),
                  (padding, max(0, l_total - padding - l))))
    xw = xw[:, :, :l_total]             # no-op unless the pad overshot what is needed
    if stride == 1:
        x_d = xw.reshape(n, 1, c_in_p, l_d)
    else:
        # One-time de-interleave: x_d[b, p, c, m] = xw[b, c, m*stride + p].
        # TODO(synk): fold this transpose into the pallas input DMA for stride > 1.
        x_d = jnp.transpose(xw.reshape(n, c_in_p, l_d, stride), (0, 3, 1, 2))

    # Halo: first hw_c de-interleaved columns of body tile j+1, flattened over (n, j).
    idx = (jnp.arange(j_tiles)[:, None] + 1) * tl + jnp.arange(hw_c)[None, :]
    halo = jnp.take(x_d, idx, axis=3)                       # (N, S, C_in_p, J, hw_c)
    halo = jnp.transpose(halo, (0, 3, 1, 2, 4)).reshape(n * j_tiles, stride, c_in_p, hw_c)

    kernel = functools.partial(_conv1d_kernel, kernel_size=k, stride=stride, l_tile=tl)

    cost = pl.CostEstimate(
        flops=2 * n * c_out * k * c_in_p * l_out,
        transcendentals=0,
        bytes_accessed=(x_d.size + halo.size + w2.size) * in_item
        + n * c_out * l_out * out_item,
    )

    out = pl.pallas_call(
        kernel,
        out_shape=jax.ShapeDtypeStruct((n, c_out, l_out), out_dtype),
        grid_spec=pltpu.PrefetchScalarGridSpec(
            num_scalar_prefetch=0,
            grid=(n, n_co, j_tiles),
            in_specs=[
                # de-interleaved body tiles (auto double-buffered)
                pl.BlockSpec((None, stride, c_in_p, tl),
                             lambda b, co, j: (b, 0, 0, j)),
                # per-tile halo columns
                pl.BlockSpec((None, stride, c_in_p, hw_c),
                             lambda b, co, j: (b * j_tiles + j, 0, 0, 0)),
                # folded weight tile (resident when n_co == 1)
                # TODO(synk): pipeline_mode=pl.Buffered(1) to drop one weight buffer.
                pl.BlockSpec((tc_out, k * c_in_p),
                             lambda b, co, j: (co, 0)),
            ],
            out_specs=pl.BlockSpec((None, tc_out, tl),
                                   lambda b, co, j: (b, co, j)),
        ),
        compiler_params=pltpu.CompilerParams(
            # TODO(synk): pltpu.CORE_PARALLEL / pl.core_map over the L axis for v7x dual-TC.
            dimension_semantics=("parallel", "parallel", "parallel"),
            vmem_limit_bytes=int(vmem_cap // 2),
            allow_input_fusion=[True, True, True],
        ),
        cost_estimate=cost,
    )(x_d, halo, w2)
    return out


def _reference_conv1d(x, weight, stride, padding):
    # NCL / OIW conv, no bias -- matches torch.nn.Conv1d semantics.
    return jax.lax.conv_general_dilated(
        x.astype(jnp.float32), weight.astype(jnp.float32),
        window_strides=(stride,), padding=[(padding, padding)],
        dimension_numbers=("NCH", "OIH", "NCH"))


if __name__ == "__main__":
    key = jax.random.PRNGKey(0)
    k1, k2, k3, k4 = jax.random.split(key, 4)

    # 1) base config (K=3, stride=1, padding=1) -- small shapes consistent with the module.
    N, C_IN, C_OUT, L, K, S, P = 2, 16, 16, 16, 3, 1, 1
    x = jax.random.normal(k1, (N, C_IN, L), dtype=jnp.float32)
    w = jax.random.normal(k2, (C_OUT, C_IN, K), dtype=jnp.float32) * 0.1
    out = jax.block_until_ready(conv1d(x, w, stride=S, padding=P))
    ref = _reference_conv1d(x, w, S, P)
    assert out.shape == ref.shape, (out.shape, ref.shape)
    assert jnp.allclose(out, ref, atol=5e-4, rtol=5e-4), "f32 stride=1 mismatch"

    # bf16 operands + f32 accumulation (MXU fast path); looser tolerance vs f32 reference.
    out_bf = jax.block_until_ready(conv1d(x, w, stride=S, padding=P,
                                          compute_dtype=jnp.bfloat16))
    assert out_bf.shape == ref.shape
    assert jnp.allclose(out_bf, ref, atol=5e-2, rtol=5e-2), "bf16 mismatch"

    # 2) strided config (exercises the de-interleaved phase path): K=4, stride=2, padding=2.
    x2 = jax.random.normal(k3, (2, 16, 33), dtype=jnp.float32)
    wt2 = jax.random.normal(k4, (8, 16, 4), dtype=jnp.float32) * 0.1
    out2 = jax.block_until_ready(conv1d(x2, wt2, stride=2, padding=2))
    ref2 = _reference_conv1d(x2, wt2, 2, 2)
    assert out2.shape == ref2.shape, (out2.shape, ref2.shape)
    assert jnp.allclose(out2, ref2, atol=5e-4, rtol=5e-4), "f32 stride=2 mismatch"

    # 3) multi-tile + non-multiple-of-8 channels + partial last output block.
    x3 = jax.random.normal(k1, (1, 20, 400), dtype=jnp.float32)
    wt3 = jax.random.normal(k2, (24, 20, 3), dtype=jnp.float32) * 0.1
    out3 = jax.block_until_ready(conv1d(x3, wt3, stride=1, padding=1, l_tile=128))
    ref3 = _reference_conv1d(x3, wt3, 1, 1)
    assert out3.shape == ref3.shape, (out3.shape, ref3.shape)
    assert jnp.allclose(out3, ref3, atol=5e-4, rtol=5e-4), "f32 multi-tile mismatch"

    print("KERNEL_OK")
</pallas_src>

<mosaic_0001>
module attributes {stable_mosaic.version = 11 : i64} {
  func.func @_conv1d_kernel(%arg0: i32, %arg1: i32, %arg2: i32, %arg3: memref<1x1x16x128xf32, #tpu.memory_space<vmem>>, %arg4: memref<1x1x16x2xf32, #tpu.memory_space<vmem>>, %arg5: memref<16x48xf32, #tpu.memory_space<vmem>>, %arg6: memref<1x16x128xf32, #tpu.memory_space<vmem>>) attributes {dimension_semantics = [#tpu.dimension_semantics<parallel>, #tpu.dimension_semantics<parallel>, #tpu.dimension_semantics<parallel>], iteration_bounds = array<i64: 2, 1, 1>, scalar_prefetch = 0 : i64, scratch_operands = 0 : i64, tpu.core_type = #tpu.core_type<tc>, window_params = [{transform_indices = @transform_0, window_bounds = array<i64: 1, 1, 16, 128>}, {transform_indices = @transform_1, window_bounds = array<i64: 1, 1, 16, 2>}, {transform_indices = @transform_2, window_bounds = array<i64: 16, 48>}, {transform_indices = @transform_3, window_bounds = array<i64: 1, 16, 128>}]} {
    %c0 = arith.constant 0 : index
    %c0_0 = arith.constant 0 : index
    %c0_1 = arith.constant 0 : index
    %c0_2 = arith.constant 0 : index
    %0 = vector.load %arg3[%c0, %c0_0, %c0_1, %c0_2] : memref<1x1x16x128xf32, #tpu.memory_space<vmem>>, vector<1x1x16x128xf32>
    %1 = vector.shape_cast %0 : vector<1x1x16x128xf32> to vector<1x16x128xf32>
    %2 = vector.shape_cast %1 : vector<1x16x128xf32> to vector<16x128xf32>
    %3 = vector.shape_cast %1 : vector<1x16x128xf32> to vector<16x128xf32>
    %c0_3 = arith.constant 0 : index
    %c0_4 = arith.constant 0 : index
    %c0_5 = arith.constant 0 : index
    %c0_6 = arith.constant 0 : index
    %4 = vector.load %arg4[%c0_3, %c0_4, %c0_5, %c0_6] : memref<1x1x16x2xf32, #tpu.memory_space<vmem>>, vector<1x1x16x2xf32>
    %5 = vector.shape_cast %4 : vector<1x1x16x2xf32> to vector<16x2xf32>
    %6 = tpu.concatenate %3, %5 in 1 : vector<16x128xf32>, vector<16x2xf32> -> vector<16x130xf32>
    %7 = vector.extract_strided_slice %6 {offsets = [0, 1], sizes = [16, 128], strides = [1, 1]} : vector<16x130xf32> to vector<16x128xf32>
    %8 = vector.extract_strided_slice %6 {offsets = [0, 2], sizes = [16, 128], strides = [1, 1]} : vector<16x130xf32> to vector<16x128xf32>
    %9 = tpu.concatenate %2, %7, %8 in 0 : vector<16x128xf32>, vector<16x128xf32>, vector<16x128xf32> -> vector<48x128xf32>
    %c0_7 = arith.constant 0 : index
    %c0_8 = arith.constant 0 : index
    %10 = vector.load %arg5[%c0_7, %c0_8] : memref<16x48xf32, #tpu.memory_space<vmem>>, vector<16x48xf32>
    %cst = arith.constant dense<0.000000e+00> : vector<16x128xf32>
    %11 = tpu.matmul %10, %9, %cst {dimension_numbers = #tpu.dot_dimension_numbers<[1], [0], [0], [1], [0, 0, 1, 1], [], []>} : vector<16x48xf32>, vector<48x128xf32>, vector<16x128xf32> -> vector<16x128xf32>
    %c0_9 = arith.constant 0 : index
    %c0_10 = arith.constant 0 : index
    %c0_11 = arith.constant 0 : index
    %12 = vector.load %arg6[%c0_9, %c0_10, %c0_11] : memref<1x16x128xf32, #tpu.memory_space<vmem>>, vector<1x16x128xf32>
    %13 = vector.shape_cast %12 : vector<1x16x128xf32> to vector<16x128xf32>
    %14 = vector.shape_cast %11 : vector<16x128xf32> to vector<1x16x128xf32>
    tpu.vector_store %arg6[%c0_9, %c0_10, %c0_11], %14 {strides = array<i32>} : memref<1x16x128xf32, #tpu.memory_space<vmem>>, vector<1x16x128xf32>,
    return
  }
  func.func @transform_0(%arg0: i32, %arg1: i32, %arg2: i32) -> (i32, i32, i32, i32) {
    %c0_i32 = arith.constant 0 : i32
    %c0_i32_0 = arith.constant 0 : i32
    %c0_i32_1 = arith.constant 0 : i32
    return %arg0, %c0_i32, %c0_i32_0, %arg2 : i32, i32, i32, i32
  }
  func.func @transform_1(%arg0: i32, %arg1: i32, %arg2: i32) -> (i32, i32, i32, i32) {
    %c1_i32 = arith.constant 1 : i32
    %0 = arith.muli %arg0, %c1_i32 : i32
    %1 = arith.addi %0, %arg2 : i32
    %c0_i32 = arith.constant 0 : i32
    %c0_i32_0 = arith.constant 0 : i32
    %c0_i32_1 = arith.constant 0 : i32
    %c0_i32_2 = arith.constant 0 : i32
    return %1, %c0_i32, %c0_i32_0, %c0_i32_1 : i32, i32, i32, i32
  }
  func.func @transform_2(%arg0: i32, %arg1: i32, %arg2: i32) -> (i32, i32) {
    %c0_i32 = arith.constant 0 : i32
    %c0_i32_0 = arith.constant 0 : i32
    return %arg1, %c0_i32 : i32, i32
  }
  func.func @transform_3(%arg0: i32, %arg1: i32, %arg2: i32) -> (i32, i32, i32) {
    %c0_i32 = arith.constant 0 : i32
    return %arg0, %arg1, %arg2 : i32, i32, i32
  }
}

</mosaic_0001>

<bundles_post_ra>
// kernel: tpu_custom_call.1
= control target key start
LH: loop header
LB: loop body
LE: loop exit
PB: predicated region body
PF: predicated region fallthrough
CT: control target
= control target key end

     0   :  { %8 = vsyncpa [#allocation3], 0  ;;  %s999_s0 = inlined_call_operand.hbm [shape: f32[2,1,16,130], index: 0, kind: input, shape index: {}]   ;;  %s1000_s1 = inlined_call_operand.vmem [shape: f32[2,1,16,2], index: 1, kind: input, shape index: {}]   ;;  %s1001_s2 = inlined_call_operand.vmem [shape: f32[16,48], index: 2, kind: input, shape index: {}]   ;;  %s1002_s3 = inlined_call_operand.hbm [shape: f32[2,16,16], index: 3, kind: output, shape index: {}]  }
   0x1   :  { %10 = vsyncpa [#allocation3 + $0x1], 0 }
   0x2   :  { %11 = vsyncpa [#allocation4], 0 }
   0x3   :  { %13 = vsyncpa [#allocation4 + $0x1], 0  ;;  %s809_s12 = smov 0   ;;  %s811_s13 = smov 0  }
   0x4   :  { %s813_s14 = smov 0   ;;  %s815_s15 = smov 0  }
   0x5   :  { %s817_s16 = smov 0   ;;  %s819_s17 = smov 0  }
   0x6 LB: > { %s519_s18 = sadd.s32 4294967295, %s778_s17   ;;  %s520_s19 = sadd.s32 4294967294, %s778_s17   ;;  %s778_s17 = sphi %s819_s17, %s19_s17   ;;  %s774_s16 = sphi %s817_s16, %s1016_s16   ;;  %s770_s15 = sphi %s815_s15, %s1015_s15   ;;  %s766_s14 = sphi %s813_s14, %s1014_s14   ;;  %s762_s13 = sphi %s811_s13, %s1013_s13   ;;  %s758_s12 = sphi %s809_s12, %s1012_s12  }
   0x7   : > { %s38_s20 = sadd.s32 1, %s774_s16  ;;  %s47_s21 = sadd.s32 1, %s766_s14 }
   0x8   : > { %p40_p0 = scmp.ge.s32.totalorder %s38_s20, 2  ;;  %p54_p1 = scmp.ne.s32.totalorder %s766_s14, %s762_s13 }
   0x9   : > { %p55_p2 = scmp.eq.s32.totalorder %s778_s17, 0  ;;  %p60_p3 = scmp.ne.s32.totalorder %s762_s13, %s758_s12 }
   0xa   : > { %s1018_s20 = smov (%p40_p0, %s38_s20), 0  ;;  %p61_p5 = scmp.eq.s32.totalorder %s519_s18, 0 }
   0xb   : > { %p850_p4 = por %p55_p2, %p54_p1  ;;  %s42_s23 = ssub.s32 %s774_s16, %s1018_s20 }
   0xc   : > { %p142_p6 = scmp.eq.s32.totalorder %s519_s18, 1  ;;  %p45_p7 = scmp.eq.s32.totalorder %s42_s23, 0 }
   0xd   : > { %p856_p8 = por %p61_p5, %p60_p3  ;;  %p148_p10 = scmp.eq.s32.totalorder %s520_s19, 1 }
   0xe   : > { %p860_p9 = por %p142_p6, %p54_p1  ;;  %p589_p13 = scmp.lt.s32.totalorder %s778_s17, 2 }
   0xf   : > { %s865_s26 = scalar_select %p45_p7, %s766_s14, %s47_s21  }
  0x10   : > { %s1006_s25 = scalar_select %p860_p9, 1, 0 }
  0x11   : > { %p867_p11 = por %p148_p10, %p60_p3  ;;  %s177_s28 = sand.u32 1, %s766_s14  }
  0x12   : > { %s524_s29 = sshll.u32 %s177_s28, 4  ;;  %s539_s30 = sshll.u32 %s774_s16, 9 }
  0x13   : > { %s1007_s27 = scalar_select %p867_p11, 1, 0 }
  0x14   : > { %s878_s6 = scalar_lea.hbm %s999_s0, %s539_s30  ;;  %s181_s7 = scalar_lea.vmem [#allocation2], %s524_s29 }
  0x15   : > { %s189_s8 = sshll.u32 %s181_s7, 4  ;;  %p884_p0 = pnand %p589_p13, %p850_p4  ;;  %s880_s8 = int_to_ptr.vmem [resolvable:$true] %s189_s8 }
  0x16   : > { %s888_s10 = scalar_lea.sflag [#allocation3], %s177_s28  ;;  %s666_s11 = scalar_lea.hbm %s878_s6, 256 }
  0x17   : > { %p667_p1 = scmp.ne.s32.totalorder %s878_s6, %s666_s11  ;;  %p668_p2 = pneg %p884_p0 }
  0x18   : > { %s671_s21 = scalar_lea.hbm %s999_s0, 1024  ;;  %p672_p4 = scmp.lt.u32.totalorder %s878_s6, %s999_s0 }
  0x19   : > { %p669_p3 = pnand %p668_p2, %p667_p1  ;;  %p673_p6 = scmp.lt.u32.totalorder %s671_s21, %s666_s11 }
  0x1a   : > { %p675_p10 = scmp.lt.u32.totalorder %s666_s11, %s878_s6 }
  0x1b   : > { %p670_p5 = pneg %p669_p3  ;;  %p674_p7 = por %p673_p6, %p672_p4 }
  0x1d   : > { %p676_p13 = por %p675_p10, %p674_p7 }
  0x1f   : > { %p677_p12 = pnand %p676_p13, %p670_p5 }
  0x21   : > { %680 = shalt.err (!%p677_p12)
}
  0x22   : > { %s681_s28 = scalar_lea.vmem %s880_s8, 256  ;;  %s780_s29 = smov [#allocation2]  }
  0x23   : > { %p682_p1 = scmp.ne.s32.totalorder %s880_s8, %s681_s28  ;;  %s686_s30 = sshll.u32 %s780_s29, 4  ;;  %s687_s30 = int_to_ptr.vmem [resolvable:$false] %s686_s30 }
  0x24   : > { %s688_s4 = scalar_lea.vmem %s687_s30, 512  ;;  %p689_p9 = scmp.lt.s32.totalorder %s880_s8, %s687_s30 }
  0x25   : > { %p684_p3 = pnand %p682_p1, %p668_p2  ;;  %p690_p4 = scmp.lt.s32.totalorder %s688_s4, %s681_s28 }
  0x27   : > { %p685_p11 = pneg %p684_p3  ;;  %p691_p6 = por %p690_p4, %p689_p9 }
  0x29   : > { %p692_p7 = pnand %p691_p6, %p685_p11 }
  0x2b   : > { %695 = shalt.err (!%p692_p7)
}
  0x2c   : > { %s781_s5 = smov 256   ;;  %s782_s7 = smov 128  }
  0x2d   : > { %s783_s11 = smov 8   ;;  %p527_p12 = scmp.ge.s32.totalorder %s778_s17, 1 }
  0x2e   : > { %584 = dma.hbm_to_vmem [thread:$0]  (!%p884_p0), %s878_s6, 256, %s880_s8, %s888_s10, %s781_s5, %s782_s7, %s783_s11  }
  0x2f   : > { %p207_p2 = scmp.lt.s32.totalorder %s778_s17, 3 }
  0x31   : > { %p208_p5 = pnand %p527_p12, %p207_p2 }
  0x32   : > { %s919_s18 = sand.u32 (!%p208_p5), 1, %s762_s13  }
  0x33   : > { %211 = sbr.rel (%p208_p5) target bundleno = 428 (0x1ac), region = 32  ;;  %s528_s19 = sshll.u32 (!%p208_p5), %s919_s18, 4 }
  0x34   : > { %s214_s21 = scalar_lea.sflag (!%p208_p5), [#allocation3], %s919_s18  ;;  %s217_s22 = scalar_lea.vmem (!%p208_p5), [#allocation2], %s528_s19 }
  0x3a   : > { %749 = dma.done.wait (%p856_p8), %s214_s21, 256  }
  0x3b   : > { %751 = vsyncadd (%p856_p8), %s214_s21, 4294967040  ;;  %p252_p9 = scmp.lt.s32.totalorder %s770_s15, 1  ;;  %v265_v0 = vld [vmem:[%s217_s22] sm:$0xff]  ;;  %v266_v4 = vld [vmem:[%s217_s22 + $0x8] sm:$0xff]  ;;  %s784_s28 = smov 126   ;;  %vm301_vm0 = vcmask 392192  }
  0x3c   : > { %v565_v5 = vpack.c.bf16 %v266_v4, %v265_v0  ;;  %s785_s29 = smov 127   ;;  %v299_v7 = vld [vmem:[%s1001_s2] sm:$0xff]  ;;  %vm281_vm1 = vcmask 1039360   ;;  %vm294_vm2 = vcmask 1031168   ;;  %v300_v26 = vld [vmem:[%s1001_s2 + $0x8] sm:$0xff]  ;;  %s250_s7 = scalar_lea.vmem [#allocation5], %s528_s19 }
  0x3d   : > { %s253_s6 = scalar_select %p252_p9, %s770_s15, 1  ;;  %562 = vmatprep.mubr.msk.f32.mxu0 %vm301_vm0, %v299_v7 }
  0x3e   : > { %566 = vmatprep.subr.bf16.mxu0 %v565_v5  ;;  %s402_s11 = sshll.u32 %s250_s7, 4  ;;  %s541_s21 = sshll.u32 %s770_s15, 8  ;;  %s945_s11 = int_to_ptr.vmem [resolvable:$true] %s402_s11 }
  0x3f   : > { %s540_s8 = sshll.u32 %s253_s6, 4  ;;  %568 = vmatpush3.bf16.msra.mxu0 %v565_v5  ;;  %s386_s9 = scalar_lea.sflag [#allocation4], %s919_s18 }
  0x40   : > { %s256_s23 = scalar_lea.vmem %s1000_s1, %s540_s8  ;;  %s950_s8 = scalar_lea.hbm %s1002_s3, %s541_s21 }
  0x41   : > { %v267_v1 = vld [vmem:[%s256_s23] sm:$0xff]  ;;  %v268_v2 = vld [vmem:[%s256_s23 + $0x8] sm:$0xff]  ;;  %s696_s10 = scalar_lea.vmem %s945_s11, 256  ;;  %p1009_p11 = scmp.ne.s32.totalorder %s1006_s25, 0 }
  0x42   : > { %v656_v3 = vpack.i.bf16 %v267_v1, %v265_v0  ;;  %v661_v6 = vpack.i.bf16 %v268_v2, %v266_v4  ;;  %p697_p8 = scmp.ne.s32.totalorder %s945_s11, %s696_s10  ;;  %s786_s15 = smov [#allocation5]  }
  0x43   : > { %s700_s19 = sshll.u32 %s786_s15, 4  ;;  %s701_s19 = int_to_ptr.vmem [resolvable:$false] %s700_s19 }
  0x44   : > { %657 = vrot.lane.b32.xlu1 %v656_v3, %s784_s28  ;;  %647 = vrot.lane.b32.xlu0 %v656_v3, %s785_s29  ;;  %p698_p0 = pnand %p697_p8, %p1009_p11  ;;  %s702_s23 = scalar_lea.vmem %s701_s19, 512 }
  0x45   : > { %p703_p13 = scmp.lt.s32.totalorder %s945_s11, %s701_s19  ;;  %p704_p1 = scmp.lt.s32.totalorder %s702_s23, %s696_s10 }
  0x46   : > { %p699_p10 = pneg %p698_p0 }
  0x47   : > { %p705_p3 = por %p704_p1, %p703_p13 }
  0x48   : > { %662 = vrot.lane.b32.xlu1 %v661_v6, %s784_s28  ;;  %652 = vrot.lane.b32.xlu0 %v661_v6, %s785_s29 }
  0x49   : > { %p706_p4 = pnand %p705_p3, %p699_p10 }
  0xb6   : > { %v658_v8 = vpop.permute.xlu1 %657  ;;  %v648_v9 = vpop.permute.xlu0 %647 }
  0xb7   : > { %v660_v10 = vunpack.i.h.bf16 %v658_v8  ;;  %v659_v11 = vunpack.i.l.bf16 %v658_v8  ;;  %v650_v12 = vunpack.i.h.bf16 %v648_v9  ;;  %v649_v13 = vunpack.i.l.bf16 %v648_v9 }
  0xb9   : > { %v282_v20 = vsel %vm281_vm1, %v649_v13, %v650_v12  ;;  %v295_v22 = vsel %vm294_vm2, %v659_v11, %v660_v10 }
  0xba   : > { %v663_v14 = vpop.permute.xlu1 %662  ;;  %v653_v15 = vpop.permute.xlu0 %652 }
  0xbb   : > { %v665_v16 = vunpack.i.h.bf16 %v663_v14  ;;  %v664_v17 = vunpack.i.l.bf16 %v663_v14  ;;  %v655_v18 = vunpack.i.h.bf16 %v653_v15  ;;  %v654_v19 = vunpack.i.l.bf16 %v653_v15 }
  0xbd   : > { %v283_v21 = vsel %vm281_vm1, %v654_v19, %v655_v18  ;;  %v296_v23 = vsel %vm294_vm2, %v664_v17, %v665_v16 }
  0xbe   : > { %v569_v24 = vpack.c.bf16 %v283_v21, %v282_v20  ;;  %v573_v25 = vpack.c.bf16 %v296_v23, %v295_v22 }
  0xc0   : > { %570 = vmatprep.subr.bf16.mxu0 %v569_v24 }
  0xc1   : > { %572 = vmatpush3.bf16.msra.mxu0 %v569_v24 }
  0xc2   : > { %574 = vmatprep.subr.bf16.mxu0 %v573_v25 }
  0xc5   : > { %576 = vmatpush3.bf16.msra.mxu0 %v573_v25 }
  0xc8   : > { %563 = vmatmul.mubr.msk.f32.vlgmr.msra.gmra.mrb[0].mxu0 %vm301_vm0, %v300_v26 }
 0x19b   : > { %v564_v27 = vpop.f32.mrb[0].mxu0 }
 0x19c   : > { %384 = vst [vmem:[%s250_s7 + $0x8] sm:$0xff] %v564_v27  ;;  %v374_v28 = vpop.f32.mrb[1].mxu0 }
 0x19d   : > { %383 = vst [vmem:[%s250_s7] sm:$0xff] %v374_v28 }
 0x19e   : > { %709 = shalt.err (!%p706_p4)
}
 0x19f   : > { %s710_s28 = scalar_lea.hbm %s950_s8, 256  ;;  %s714_s30 = scalar_lea.hbm %s1002_s3, 512 }
 0x1a0   : > { %p711_p6 = scmp.ne.s32.totalorder %s950_s8, %s710_s28  ;;  %p715_p2 = scmp.lt.u32.totalorder %s950_s8, %s1002_s3 }
 0x1a1   : > { %p716_p5 = scmp.lt.u32.totalorder %s714_s30, %s710_s28  ;;  %p718_p8 = scmp.lt.u32.totalorder %s710_s28, %s950_s8 }
 0x1a2   : > { %p712_p7 = pnand %p711_p6, %p1009_p11 }
 0x1a3   : > { %p717_p9 = por %p716_p5, %p715_p2 }
 0x1a4   : > { %p713_p12 = pneg %p712_p7 }
 0x1a5   : > { %p719_p0 = por %p718_p8, %p717_p9 }
 0x1a7   : > { %p720_p10 = pnand %p719_p0, %p713_p12 }
 0x1a9   : > { %723 = shalt.err (!%p720_p10)
}
 0x1aa   : > { %s787_s7 = smov 128   ;;  %s788_s21 = smov 8  }
 0x1ab   : > { %579 = dma.vmem_to_hbm [thread:$0]  (%p1009_p11), %s945_s11, 256, %s950_s8, %s386_s9, %s787_s7, %s787_s7, %s788_s21  }
 0x1ac PF: > { %s417_s22 = sand.u32 1, %s758_s12   ;;  %p1010_p13 = scmp.ne.s32.totalorder %s1007_s27, 0 }
 0x1ad   : > { %p1011_p1 = scmp.ge.s32.totalorder %s778_s17, 2  ;;  %s418_s6 = scalar_lea.sflag [#allocation4], %s417_s22 }
 0x1af   : > { %p586_p3 = pnand %p1011_p1, %p1010_p13 }
 0x1b1   : > { %753 = dma.done.wait (!%p586_p3), %s418_s6, 256  }
 0x1b2   : > { %755 = vsyncadd (!%p586_p3), %s418_s6, 4294967040  ;;  %s19_s17 = sadd.s32 1, %s778_s17   ;;  %s1012_s12 = smov %s762_s13 }
 0x1b3   : > { %p16_p4 = scmp.ge.s32.totalorder %s19_s17, 4   ;;  %s1013_s13 = smov %s766_s14 }
 0x1b4   : > { %s1014_s14 = smov %s865_s26  ;;  %s1015_s15 = smov %s774_s16 }
 0x1b5   : > { %s1016_s16 = smov %s1018_s20  ;;  %18 = sbr.rel (!%p16_p4) target bundleno = 6 (0x6), region = 83 }
 0x1bc   :  { %423 = vsyncpa [#allocation3], 1 }
 0x1bd   :  { %425 = vsyncpa [#allocation3 + $0x1], 1 }
 0x1be   :  { %426 = vsyncpa [#allocation4], 1 }
 0x1bf   :  { %428 = vsyncpa [#allocation4 + $0x1], 1 }

</bundles_post_ra>
